<compile_context>
chip_gen: v6e
topology: v6e:2x2x1
jax: 0.10.0
libtpu: 0.0.40
codegen_flags: <defaults>
</compile_context>

<pallas_src>
import functools

import numpy as np
import jax
import jax.numpy as jnp
from jax.experimental import pallas as pl
from jax.experimental.pallas import tpu as pltpu


def _round_up(n, m):
    return (n + m - 1) // m * m


# -----------------------------------------------------------------------------
# Fused InBlock kernel (one grid step = B_tile images folded into the lane axis)
# -----------------------------------------------------------------------------
def _make_inblock_kernel(H, W, B_tile):
    HW = H * W
    L = B_tile * HW                       # lane extent of one grid step
    # 3x3 taps, tap order t = ky*3 + kx  ->  spatial offset (dy, dx)
    offsets = [(ky - 1, kx - 1) for ky in range(3) for kx in range(3)]

    def im2col(act, masks):
        """act: (C, L) f32;  masks: (9, L) f32  ->  (9*C, L) f32 patches."""
        parts = []
        for t, (dy, dx) in enumerate(offsets):
            off = dy * W + dx                       # shift in flattened H*W
            if off == 0:
                parts.append(act)                   # center tap: no shift/mask
            else:
                # shifted[p] = act[p + off]; wrap-around positions (image edge
                # AND cross-image wrap) are zeroed by the per-image-tiled mask.
                shifted = pltpu.roll(act, (-off) % L, 1)
                parts.append(shifted * masks[t:t + 1, :])
        return jnp.concatenate(parts, axis=0)       # (9*C, L)

    def conv3x3(act, w_ref, masks):
        return jnp.dot(w_ref[...], im2col(act, masks).astype(jnp.bfloat16),
                       preferred_element_type=jnp.float32)

    def kernel(x_ref, mask_ref, w_cbr_ref, w_brc1_ref, w_last_ref, vec_ref,
               o_ref):
        masks = mask_ref[...]                        # (9, L) f32
        vecs = vec_ref[...]                          # (Cout_p, 8) f32, packed
        b_cbr = vecs[:, 0:1]
        s1, t1 = vecs[:, 1:2], vecs[:, 2:3]
        s2, t2 = vecs[:, 3:4], vecs[:, 4:5]

        x = x_ref[...]                               # (Cin_p, L) f32

        # cbr: conv3x3 -> BN -> ReLU  (BN scale folded into w_cbr, shift = bias)
        x1 = jnp.maximum(conv3x3(x, w_cbr_ref, masks) + b_cbr, 0.0)

        # res.brc1: BN -> ReLU -> conv3x3
        a1 = jnp.maximum(x1 * s1 + t1, 0.0)
        x2 = conv3x3(a1, w_brc1_ref, masks)

        # res.brc2: BN -> ReLU -> conv3x3, with the 1x1 skip conv FUSED into
        # the same matmul:  K rows = [im2col(a2) (9*Cout_p) | x1 (Cout_p)],
        # weight = [w_brc2 | w_skip] along K  =>  result = conv(a2) + skip.
        a2 = jnp.maximum(x2 * s2 + t2, 0.0)
        patches = jnp.concatenate([im2col(a2, masks), x1], axis=0)
        o_ref[...] = jnp.dot(w_last_ref[...], patches.astype(jnp.bfloat16),
                             preferred_element_type=jnp.float32)

    return kernel


def _conv_w_to_kernel(w_hwio, cin_p, cout_p):
    """(KH,KW,I,O) HWIO -> (O_p, KH*KW*I_p), tap-major / input-channel-minor."""
    kh, kw, cin, cout = w_hwio.shape
    w = jnp.pad(w_hwio, ((0, 0), (0, 0), (0, cin_p - cin), (0, cout_p - cout)))
    return jnp.transpose(w, (3, 0, 1, 2)).reshape(cout_p, kh * kw * cin_p)


@functools.partial(jax.jit, static_argnames=("steps",))
def _in_block_impl(x_nchw, params, *, steps):
    N, Cin, H, W = x_nchw.shape
    HW = H * W
    Cout = params["w_cbr"].shape[-1]
    Cin_p, Cout_p = _round_up(Cin, 8), _round_up(Cout, 8)
    B_tile = (N + steps - 1) // steps
    N_pad = steps * B_tile
    L = B_tile * HW
    f32, bf16 = jnp.float32, jnp.bfloat16

    def pad_c(v):                                    # per-channel vector -> (Cout_p,1)
        return jnp.pad(v, (0, Cout_p - v.shape[0])).reshape(Cout_p, 1).astype(f32)

    # Fold cbr's BatchNorm scale into the conv weight, shift becomes a bias.
    cbr_scale_p = jnp.pad(params["cbr_scale"], (0, Cout_p - Cout))
    w_cbr_k = (_conv_w_to_kernel(params["w_cbr"], Cin_p, Cout_p)
               * cbr_scale_p[:, None]).astype(bf16)           # (Cout_p, 9*Cin_p)
    w_brc1_k = _conv_w_to_kernel(params["w_brc1"], Cout_p, Cout_p).astype(bf16)
    # Fuse the 1x1 skip conv into the final 3x3 conv along K (9*C -> 10*C).
    w_last_k = jnp.concatenate(
        [_conv_w_to_kernel(params["w_brc2"], Cout_p, Cout_p),
         _conv_w_to_kernel(params["w_skip"], Cout_p, Cout_p)],
        axis=1).astype(bf16)                                  # (Cout_p, 10*Cout_p)

    # Pack the five per-channel vectors into a single (Cout_p, 8) input.
    vecs = jnp.concatenate(
        [pad_c(params["cbr_shift"]),
         pad_c(params["bn1_scale"]), pad_c(params["bn1_shift"]),
         pad_c(params["bn2_scale"]), pad_c(params["bn2_shift"]),
         jnp.zeros((Cout_p, 3), f32)], axis=1)

    # Per-tap boundary-validity masks (the conv's zero padding), tiled once per
    # image so roll wrap-around across image boundaries is zeroed as well.
    hh, ww = np.divmod(np.arange(HW), W)
    masks_np = np.stack([((hh + dy >= 0) & (hh + dy < H)
                          & (ww + dx >= 0) & (ww + dx < W))
                         for dy in (-1, 0, 1) for dx in (-1, 0, 1)])
    masks = jnp.tile(jnp.asarray(masks_np.astype(np.float32)), (1, B_tile))

    # Fold the batch into the lane axis: (steps, Cin_p, B_tile*HW).
    x = jnp.pad(x_nchw.reshape(N, Cin, HW).astype(f32),
                ((0, N_pad - N), (0, Cin_p - Cin), (0, 0)))
    x = (x.reshape(steps, B_tile, Cin_p, HW)
          .transpose(0, 2, 1, 3).reshape(steps, Cin_p, L))

    kernel = _make_inblock_kernel(H, W, B_tile)
    const = lambda s: (0, 0)

    out = pl.pallas_call(
        kernel,
        out_shape=jax.ShapeDtypeStruct((steps, Cout_p, L), f32),
        grid=(steps,),
        in_specs=[
            pl.BlockSpec((pl.Squeezed(), Cin_p, L), lambda s: (s, 0, 0)),  # x
            pl.BlockSpec((9, L), const),                                   # masks
            pl.BlockSpec((Cout_p, 9 * Cin_p), const),                      # w_cbr
            pl.BlockSpec((Cout_p, 9 * Cout_p), const),                     # w_brc1
            pl.BlockSpec((Cout_p, 10 * Cout_p), const),                    # w_brc2|w_skip
            pl.BlockSpec((Cout_p, 8), const),                              # packed vecs
        ],
        out_specs=pl.BlockSpec((pl.Squeezed(), Cout_p, L), lambda s: (s, 0, 0)),
        compiler_params=pltpu.CompilerParams(
            dimension_semantics=("parallel",),
            vmem_limit_bytes=32 * 1024 * 1024),
    )(x, masks, w_cbr_k, w_brc1_k, w_last_k, vecs)

    out = (out.reshape(steps, Cout_p, B_tile, HW)
              .transpose(0, 2, 1, 3).reshape(N_pad, Cout_p, HW))
    return out[:N, :Cout].reshape(N, Cout, H, W)


def in_block_forward(x_nchw, params):
    N = x_nchw.shape[0]
    # v7x has two TensorCores per chip: keep >=2 parallel grid steps there so
    # both TCs get work; v5e/v6e (one TC) use a single wide step (less overhead).
    kind = jax.devices()[0].device_kind.lower()
    steps = min(N, 2) if "v7" in kind else 1
    steps = max(steps, 1)
    return _in_block_impl(x_nchw, params, steps=steps)


# -----------------------------------------------------------------------------
# Parameter construction (deterministic, synthetic; BN folded to scale/shift)
# -----------------------------------------------------------------------------
def _bn_affine(key, channels, eps=1e-5):
    k1, k2, k3, k4 = jax.random.split(key, 4)
    gamma = jax.random.uniform(k1, (channels,), jnp.float32, 0.5, 1.5)
    beta = 0.1 * jax.random.normal(k2, (channels,), jnp.float32)
    running_mean = 0.1 * jax.random.normal(k3, (channels,), jnp.float32)
    running_var = jax.random.uniform(k4, (channels,), jnp.float32, 0.5, 1.5)
    scale = gamma / jnp.sqrt(running_var + eps)
    shift = beta - running_mean * scale
    return scale, shift


def _conv_weight(key, ksize, cin, cout):
    # HWIO layout (PyTorch (O,I,KH,KW) -> transpose to (KH,KW,I,O)); synthetic.
    return 0.1 * jax.random.normal(key, (ksize, ksize, cin, cout), jnp.float32)


def init_in_block_params(key, in_features, out_features):
    ks = jax.random.split(key, 7)
    p = {}
    p["w_cbr"] = _conv_weight(ks[0], 3, in_features, out_features)
    p["cbr_scale"], p["cbr_shift"] = _bn_affine(ks[1], out_features)
    p["w_skip"] = _conv_weight(ks[2], 1, out_features, out_features)
    p["bn1_scale"], p["bn1_shift"] = _bn_affine(ks[3], out_features)
    p["w_brc1"] = _conv_weight(ks[4], 3, out_features, out_features)
    p["bn2_scale"], p["bn2_shift"] = _bn_affine(ks[5], out_features)
    p["w_brc2"] = _conv_weight(ks[6], 3, out_features, out_features)
    return p


# -----------------------------------------------------------------------------
# Pure-JAX reference (sanity check)
# -----------------------------------------------------------------------------
def _conv_ref(x_nhwc, w_hwio):
    pad = (w_hwio.shape[0] - 1) // 2
    return jax.lax.conv_general_dilated(
        x_nhwc, w_hwio, window_strides=(1, 1),
        padding=[(pad, pad), (pad, pad)],
        dimension_numbers=("NHWC", "HWIO", "NHWC"),
        precision=jax.lax.Precision.HIGHEST)


def in_block_reference(x_nchw, p):
    x = jnp.transpose(x_nchw, (0, 2, 3, 1)).astype(jnp.float32)
    x1 = jnp.maximum(_conv_ref(x, p["w_cbr"]) * p["cbr_scale"]
                     + p["cbr_shift"], 0.0)
    skip = _conv_ref(x1, p["w_skip"])
    a1 = jnp.maximum(x1 * p["bn1_scale"] + p["bn1_shift"], 0.0)
    x2 = _conv_ref(a1, p["w_brc1"])
    a2 = jnp.maximum(x2 * p["bn2_scale"] + p["bn2_shift"], 0.0)
    x3 = _conv_ref(a2, p["w_brc2"]) + skip
    return jnp.transpose(x3, (0, 3, 1, 2))


if __name__ == "__main__":
    key = jax.random.PRNGKey(0)
    k_x, k_p = jax.random.split(key)

    N, Cin, Cout, H, W = 2, 4, 8, 16, 16
    x = jax.random.normal(k_x, (N, Cin, H, W), jnp.float32)   # NCHW like PyTorch
    params = init_in_block_params(k_p, Cin, Cout)

    out = jax.block_until_ready(in_block_forward(x, params))
    assert out.shape == (N, Cout, H, W), out.shape

    ref = in_block_reference(x, params)
    max_err = float(jnp.max(jnp.abs(out - ref)))
    # bf16 MXU operands (f32 accumulate) vs. an f32 HIGHEST-precision reference.
    assert max_err < 5e-2, f"max abs error too large: {max_err}"

    print("KERNEL_OK")
</pallas_src>

<mosaic_0001>
module attributes {stable_mosaic.version = 11 : i64} {
  func.func @kernel(%arg0: i32, %arg1: memref<1x8x512xf32, #tpu.memory_space<vmem>>, %arg2: memref<9x512xf32, #tpu.memory_space<vmem>>, %arg3: memref<8x72xbf16, #tpu.memory_space<vmem>>, %arg4: memref<8x72xbf16, #tpu.memory_space<vmem>>, %arg5: memref<8x80xbf16, #tpu.memory_space<vmem>>, %arg6: memref<8x8xf32, #tpu.memory_space<vmem>>, %arg7: memref<1x8x512xf32, #tpu.memory_space<vmem>>) attributes {dimension_semantics = [#tpu.dimension_semantics<parallel>], iteration_bounds = array<i64: 1>, scalar_prefetch = 0 : i64, scratch_operands = 0 : i64, tpu.core_type = #tpu.core_type<tc>, window_params = [{transform_indices = @transform_0, window_bounds = array<i64: 1, 8, 512>}, {pipeline_mode = #tpu.pipeline_mode<synchronous>, transform_indices = @transform_1, window_bounds = array<i64: 9, 512>}, {pipeline_mode = #tpu.pipeline_mode<synchronous>, transform_indices = @transform_2, window_bounds = array<i64: 8, 72>}, {pipeline_mode = #tpu.pipeline_mode<synchronous>, transform_indices = @transform_3, window_bounds = array<i64: 8, 72>}, {pipeline_mode = #tpu.pipeline_mode<synchronous>, transform_indices = @transform_4, window_bounds = array<i64: 8, 80>}, {pipeline_mode = #tpu.pipeline_mode<synchronous>, transform_indices = @transform_5, window_bounds = array<i64: 8, 8>}, {transform_indices = @transform_6, window_bounds = array<i64: 1, 8, 512>}]} {
    %c0 = arith.constant 0 : index
    %c0_0 = arith.constant 0 : index
    %0 = vector.load %arg2[%c0, %c0_0] : memref<9x512xf32, #tpu.memory_space<vmem>>, vector<9x512xf32>
    %c0_1 = arith.constant 0 : index
    %c0_2 = arith.constant 0 : index
    %1 = vector.load %arg6[%c0_1, %c0_2] : memref<8x8xf32, #tpu.memory_space<vmem>>, vector<8x8xf32>
    %2 = vector.extract_strided_slice %1 {offsets = [0, 0], sizes = [8, 1], strides = [1, 1]} : vector<8x8xf32> to vector<8x1xf32>
    %3 = vector.extract_strided_slice %1 {offsets = [0, 1], sizes = [8, 1], strides = [1, 1]} : vector<8x8xf32> to vector<8x1xf32>
    %4 = vector.extract_strided_slice %1 {offsets = [0, 2], sizes = [8, 1], strides = [1, 1]} : vector<8x8xf32> to vector<8x1xf32>
    %5 = vector.extract_strided_slice %1 {offsets = [0, 3], sizes = [8, 1], strides = [1, 1]} : vector<8x8xf32> to vector<8x1xf32>
    %6 = vector.extract_strided_slice %1 {offsets = [0, 4], sizes = [8, 1], strides = [1, 1]} : vector<8x8xf32> to vector<8x1xf32>
    %c0_3 = arith.constant 0 : index
    %c0_4 = arith.constant 0 : index
    %c0_5 = arith.constant 0 : index
    %7 = vector.load %arg1[%c0_3, %c0_4, %c0_5] : memref<1x8x512xf32, #tpu.memory_space<vmem>>, vector<1x8x512xf32>
    %8 = vector.shape_cast %7 : vector<1x8x512xf32> to vector<8x512xf32>
    %c0_6 = arith.constant 0 : index
    %c0_7 = arith.constant 0 : index
    %9 = vector.load %arg3[%c0_6, %c0_7] : memref<8x72xbf16, #tpu.memory_space<vmem>>, vector<8x72xbf16>
    %c17_i32 = arith.constant 17 : i32
    %10 = tpu.dynamic_rotate %8 by %c17_i32 dim 1 : vector<8x512xf32>, i32 -> vector<8x512xf32>
    %11 = vector.extract_strided_slice %0 {offsets = [0, 0], sizes = [1, 512], strides = [1, 1]} : vector<9x512xf32> to vector<1x512xf32>
    %12 = vector.broadcast %11 : vector<1x512xf32> to vector<8x512xf32>
    %13 = arith.mulf %10, %12 : vector<8x512xf32>
    %c16_i32 = arith.constant 16 : i32
    %14 = tpu.dynamic_rotate %8 by %c16_i32 dim 1 : vector<8x512xf32>, i32 -> vector<8x512xf32>
    %15 = vector.extract_strided_slice %0 {offsets = [1, 0], sizes = [1, 512], strides = [1, 1]} : vector<9x512xf32> to vector<1x512xf32>
    %16 = vector.broadcast %15 : vector<1x512xf32> to vector<8x512xf32>
    %17 = arith.mulf %14, %16 : vector<8x512xf32>
    %c15_i32 = arith.constant 15 : i32
    %18 = tpu.dynamic_rotate %8 by %c15_i32 dim 1 : vector<8x512xf32>, i32 -> vector<8x512xf32>
    %19 = vector.extract_strided_slice %0 {offsets = [2, 0], sizes = [1, 512], strides = [1, 1]} : vector<9x512xf32> to vector<1x512xf32>
    %20 = vector.broadcast %19 : vector<1x512xf32> to vector<8x512xf32>
    %21 = arith.mulf %18, %20 : vector<8x512xf32>
    %c1_i32 = arith.constant 1 : i32
    %22 = tpu.dynamic_rotate %8 by %c1_i32 dim 1 : vector<8x512xf32>, i32 -> vector<8x512xf32>
    %23 = vector.extract_strided_slice %0 {offsets = [3, 0], sizes = [1, 512], strides = [1, 1]} : vector<9x512xf32> to vector<1x512xf32>
    %24 = vector.broadcast %23 : vector<1x512xf32> to vector<8x512xf32>
    %25 = arith.mulf %22, %24 : vector<8x512xf32>
    %c511_i32 = arith.constant 511 : i32
    %26 = tpu.dynamic_rotate %8 by %c511_i32 dim 1 : vector<8x512xf32>, i32 -> vector<8x512xf32>
    %27 = vector.extract_strided_slice %0 {offsets = [5, 0], sizes = [1, 512], strides = [1, 1]} : vector<9x512xf32> to vector<1x512xf32>
    %28 = vector.broadcast %27 : vector<1x512xf32> to vector<8x512xf32>
    %29 = arith.mulf %26, %28 : vector<8x512xf32>
    %c497_i32 = arith.constant 497 : i32
    %30 = tpu.dynamic_rotate %8 by %c497_i32 dim 1 : vector<8x512xf32>, i32 -> vector<8x512xf32>
    %31 = vector.extract_strided_slice %0 {offsets = [6, 0], sizes = [1, 512], strides = [1, 1]} : vector<9x512xf32> to vector<1x512xf32>
    %32 = vector.broadcast %31 : vector<1x512xf32> to vector<8x512xf32>
    %33 = arith.mulf %30, %32 : vector<8x512xf32>
    %c496_i32 = arith.constant 496 : i32
    %34 = tpu.dynamic_rotate %8 by %c496_i32 dim 1 : vector<8x512xf32>, i32 -> vector<8x512xf32>
    %35 = vector.extract_strided_slice %0 {offsets = [7, 0], sizes = [1, 512], strides = [1, 1]} : vector<9x512xf32> to vector<1x512xf32>
    %36 = vector.broadcast %35 : vector<1x512xf32> to vector<8x512xf32>
    %37 = arith.mulf %34, %36 : vector<8x512xf32>
    %c495_i32 = arith.constant 495 : i32
    %38 = tpu.dynamic_rotate %8 by %c495_i32 dim 1 : vector<8x512xf32>, i32 -> vector<8x512xf32>
    %39 = vector.extract_strided_slice %0 {offsets = [8, 0], sizes = [1, 512], strides = [1, 1]} : vector<9x512xf32> to vector<1x512xf32>
    %40 = vector.broadcast %39 : vector<1x512xf32> to vector<8x512xf32>
    %41 = arith.mulf %38, %40 : vector<8x512xf32>
    %42 = tpu.concatenate %13, %17, %21, %25, %8, %29, %33, %37, %41 in 0 : vector<8x512xf32>, vector<8x512xf32>, vector<8x512xf32>, vector<8x512xf32>, vector<8x512xf32>, vector<8x512xf32>, vector<8x512xf32>, vector<8x512xf32>, vector<8x512xf32> -> vector<72x512xf32>
    %43 = arith.truncf %42 : vector<72x512xf32> to vector<72x512xbf16>
    %cst = arith.constant dense<0.000000e+00> : vector<8x512xf32>
    %44 = tpu.matmul %9, %43, %cst {dimension_numbers = #tpu.dot_dimension_numbers<[1], [0], [0], [1], [0, 0, 1, 1], [], []>} : vector<8x72xbf16>, vector<72x512xbf16>, vector<8x512xf32> -> vector<8x512xf32>
    %45 = vector.broadcast %2 : vector<8x1xf32> to vector<8x512xf32>
    %46 = arith.addf %44, %45 : vector<8x512xf32>
    %cst_8 = arith.constant 0.000000e+00 : f32
    %47 = vector.broadcast %cst_8 : f32 to vector<8x512xf32>
    %48 = arith.maximumf %46, %47 : vector<8x512xf32>
    %49 = vector.broadcast %3 : vector<8x1xf32> to vector<8x512xf32>
    %50 = arith.mulf %48, %49 : vector<8x512xf32>
    %51 = vector.broadcast %4 : vector<8x1xf32> to vector<8x512xf32>
    %52 = arith.addf %50, %51 : vector<8x512xf32>
    %cst_9 = arith.constant 0.000000e+00 : f32
    %53 = vector.broadcast %cst_9 : f32 to vector<8x512xf32>
    %54 = arith.maximumf %52, %53 : vector<8x512xf32>
    %c0_10 = arith.constant 0 : index
    %c0_11 = arith.constant 0 : index
    %55 = vector.load %arg4[%c0_10, %c0_11] : memref<8x72xbf16, #tpu.memory_space<vmem>>, vector<8x72xbf16>
    %c17_i32_12 = arith.constant 17 : i32
    %56 = tpu.dynamic_rotate %54 by %c17_i32_12 dim 1 : vector<8x512xf32>, i32 -> vector<8x512xf32>
    %57 = vector.extract_strided_slice %0 {offsets = [0, 0], sizes = [1, 512], strides = [1, 1]} : vector<9x512xf32> to vector<1x512xf32>
    %58 = vector.broadcast %57 : vector<1x512xf32> to vector<8x512xf32>
    %59 = arith.mulf %56, %58 : vector<8x512xf32>
    %c16_i32_13 = arith.constant 16 : i32
    %60 = tpu.dynamic_rotate %54 by %c16_i32_13 dim 1 : vector<8x512xf32>, i32 -> vector<8x512xf32>
    %61 = vector.extract_strided_slice %0 {offsets = [1, 0], sizes = [1, 512], strides = [1, 1]} : vector<9x512xf32> to vector<1x512xf32>
    %62 = vector.broadcast %61 : vector<1x512xf32> to vector<8x512xf32>
    %63 = arith.mulf %60, %62 : vector<8x512xf32>
    %c15_i32_14 = arith.constant 15 : i32
    %64 = tpu.dynamic_rotate %54 by %c15_i32_14 dim 1 : vector<8x512xf32>, i32 -> vector<8x512xf32>
    %65 = vector.extract_strided_slice %0 {offsets = [2, 0], sizes = [1, 512], strides = [1, 1]} : vector<9x512xf32> to vector<1x512xf32>
    %66 = vector.broadcast %65 : vector<1x512xf32> to vector<8x512xf32>
    %67 = arith.mulf %64, %66 : vector<8x512xf32>
    %c1_i32_15 = arith.constant 1 : i32
    %68 = tpu.dynamic_rotate %54 by %c1_i32_15 dim 1 : vector<8x512xf32>, i32 -> vector<8x512xf32>
    %69 = vector.extract_strided_slice %0 {offsets = [3, 0], sizes = [1, 512], strides = [1, 1]} : vector<9x512xf32> to vector<1x512xf32>
    %70 = vector.broadcast %69 : vector<1x512xf32> to vector<8x512xf32>
    %71 = arith.mulf %68, %70 : vector<8x512xf32>
    %c511_i32_16 = arith.constant 511 : i32
    %72 = tpu.dynamic_rotate %54 by %c511_i32_16 dim 1 : vector<8x512xf32>, i32 -> vector<8x512xf32>
    %73 = vector.extract_strided_slice %0 {offsets = [5, 0], sizes = [1, 512], strides = [1, 1]} : vector<9x512xf32> to vector<1x512xf32>
    %74 = vector.broadcast %73 : vector<1x512xf32> to vector<8x512xf32>
    %75 = arith.mulf %72, %74 : vector<8x512xf32>
    %c497_i32_17 = arith.constant 497 : i32
    %76 = tpu.dynamic_rotate %54 by %c497_i32_17 dim 1 : vector<8x512xf32>, i32 -> vector<8x512xf32>
    %77 = vector.extract_strided_slice %0 {offsets = [6, 0], sizes = [1, 512], strides = [1, 1]} : vector<9x512xf32> to vector<1x512xf32>
    %78 = vector.broadcast %77 : vector<1x512xf32> to vector<8x512xf32>
    %79 = arith.mulf %76, %78 : vector<8x512xf32>
    %c496_i32_18 = arith.constant 496 : i32
    %80 = tpu.dynamic_rotate %54 by %c496_i32_18 dim 1 : vector<8x512xf32>, i32 -> vector<8x512xf32>
    %81 = vector.extract_strided_slice %0 {offsets = [7, 0], sizes = [1, 512], strides = [1, 1]} : vector<9x512xf32> to vector<1x512xf32>
    %82 = vector.broadcast %81 : vector<1x512xf32> to vector<8x512xf32>
    %83 = arith.mulf %80, %82 : vector<8x512xf32>
    %c495_i32_19 = arith.constant 495 : i32
    %84 = tpu.dynamic_rotate %54 by %c495_i32_19 dim 1 : vector<8x512xf32>, i32 -> vector<8x512xf32>
    %85 = vector.extract_strided_slice %0 {offsets = [8, 0], sizes = [1, 512], strides = [1, 1]} : vector<9x512xf32> to vector<1x512xf32>
    %86 = vector.broadcast %85 : vector<1x512xf32> to vector<8x512xf32>
    %87 = arith.mulf %84, %86 : vector<8x512xf32>
    %88 = tpu.concatenate %59, %63, %67, %71, %54, %75, %79, %83, %87 in 0 : vector<8x512xf32>, vector<8x512xf32>, vector<8x512xf32>, vector<8x512xf32>, vector<8x512xf32>, vector<8x512xf32>, vector<8x512xf32>, vector<8x512xf32>, vector<8x512xf32> -> vector<72x512xf32>
    %89 = arith.truncf %88 : vector<72x512xf32> to vector<72x512xbf16>
    %cst_20 = arith.constant dense<0.000000e+00> : vector<8x512xf32>
    %90 = tpu.matmul %55, %89, %cst_20 {dimension_numbers = #tpu.dot_dimension_numbers<[1], [0], [0], [1], [0, 0, 1, 1], [], []>} : vector<8x72xbf16>, vector<72x512xbf16>, vector<8x512xf32> -> vector<8x512xf32>
    %91 = vector.broadcast %5 : vector<8x1xf32> to vector<8x512xf32>
    %92 = arith.mulf %90, %91 : vector<8x512xf32>
    %93 = vector.broadcast %6 : vector<8x1xf32> to vector<8x512xf32>
    %94 = arith.addf %92, %93 : vector<8x512xf32>
    %cst_21 = arith.constant 0.000000e+00 : f32
    %95 = vector.broadcast %cst_21 : f32 to vector<8x512xf32>
    %96 = arith.maximumf %94, %95 : vector<8x512xf32>
    %c17_i32_22 = arith.constant 17 : i32
    %97 = tpu.dynamic_rotate %96 by %c17_i32_22 dim 1 : vector<8x512xf32>, i32 -> vector<8x512xf32>
    %98 = vector.extract_strided_slice %0 {offsets = [0, 0], sizes = [1, 512], strides = [1, 1]} : vector<9x512xf32> to vector<1x512xf32>
    %99 = vector.broadcast %98 : vector<1x512xf32> to vector<8x512xf32>
    %100 = arith.mulf %97, %99 : vector<8x512xf32>
    %c16_i32_23 = arith.constant 16 : i32
    %101 = tpu.dynamic_rotate %96 by %c16_i32_23 dim 1 : vector<8x512xf32>, i32 -> vector<8x512xf32>
    %102 = vector.extract_strided_slice %0 {offsets = [1, 0], sizes = [1, 512], strides = [1, 1]} : vector<9x512xf32> to vector<1x512xf32>
    %103 = vector.broadcast %102 : vector<1x512xf32> to vector<8x512xf32>
    %104 = arith.mulf %101, %103 : vector<8x512xf32>
    %c15_i32_24 = arith.constant 15 : i32
    %105 = tpu.dynamic_rotate %96 by %c15_i32_24 dim 1 : vector<8x512xf32>, i32 -> vector<8x512xf32>
    %106 = vector.extract_strided_slice %0 {offsets = [2, 0], sizes = [1, 512], strides = [1, 1]} : vector<9x512xf32> to vector<1x512xf32>
    %107 = vector.broadcast %106 : vector<1x512xf32> to vector<8x512xf32>
    %108 = arith.mulf %105, %107 : vector<8x512xf32>
    %c1_i32_25 = arith.constant 1 : i32
    %109 = tpu.dynamic_rotate %96 by %c1_i32_25 dim 1 : vector<8x512xf32>, i32 -> vector<8x512xf32>
    %110 = vector.extract_strided_slice %0 {offsets = [3, 0], sizes = [1, 512], strides = [1, 1]} : vector<9x512xf32> to vector<1x512xf32>
    %111 = vector.broadcast %110 : vector<1x512xf32> to vector<8x512xf32>
    %112 = arith.mulf %109, %111 : vector<8x512xf32>
    %c511_i32_26 = arith.constant 511 : i32
    %113 = tpu.dynamic_rotate %96 by %c511_i32_26 dim 1 : vector<8x512xf32>, i32 -> vector<8x512xf32>
    %114 = vector.extract_strided_slice %0 {offsets = [5, 0], sizes = [1, 512], strides = [1, 1]} : vector<9x512xf32> to vector<1x512xf32>
    %115 = vector.broadcast %114 : vector<1x512xf32> to vector<8x512xf32>
    %116 = arith.mulf %113, %115 : vector<8x512xf32>
    %c497_i32_27 = arith.constant 497 : i32
    %117 = tpu.dynamic_rotate %96 by %c497_i32_27 dim 1 : vector<8x512xf32>, i32 -> vector<8x512xf32>
    %118 = vector.extract_strided_slice %0 {offsets = [6, 0], sizes = [1, 512], strides = [1, 1]} : vector<9x512xf32> to vector<1x512xf32>
    %119 = vector.broadcast %118 : vector<1x512xf32> to vector<8x512xf32>
    %120 = arith.mulf %117, %119 : vector<8x512xf32>
    %c496_i32_28 = arith.constant 496 : i32
    %121 = tpu.dynamic_rotate %96 by %c496_i32_28 dim 1 : vector<8x512xf32>, i32 -> vector<8x512xf32>
    %122 = vector.extract_strided_slice %0 {offsets = [7, 0], sizes = [1, 512], strides = [1, 1]} : vector<9x512xf32> to vector<1x512xf32>
    %123 = vector.broadcast %122 : vector<1x512xf32> to vector<8x512xf32>
    %124 = arith.mulf %121, %123 : vector<8x512xf32>
    %c495_i32_29 = arith.constant 495 : i32
    %125 = tpu.dynamic_rotate %96 by %c495_i32_29 dim 1 : vector<8x512xf32>, i32 -> vector<8x512xf32>
    %126 = vector.extract_strided_slice %0 {offsets = [8, 0], sizes = [1, 512], strides = [1, 1]} : vector<9x512xf32> to vector<1x512xf32>
    %127 = vector.broadcast %126 : vector<1x512xf32> to vector<8x512xf32>
    %128 = arith.mulf %125, %127 : vector<8x512xf32>
    %129 = tpu.concatenate %100, %104, %108, %112, %96, %116, %120, %124, %128 in 0 : vector<8x512xf32>, vector<8x512xf32>, vector<8x512xf32>, vector<8x512xf32>, vector<8x512xf32>, vector<8x512xf32>, vector<8x512xf32>, vector<8x512xf32>, vector<8x512xf32> -> vector<72x512xf32>
    %130 = tpu.concatenate %129, %48 in 0 : vector<72x512xf32>, vector<8x512xf32> -> vector<80x512xf32>
    %c0_30 = arith.constant 0 : index
    %c0_31 = arith.constant 0 : index
    %131 = vector.load %arg5[%c0_30, %c0_31] : memref<8x80xbf16, #tpu.memory_space<vmem>>, vector<8x80xbf16>
    %132 = arith.truncf %130 : vector<80x512xf32> to vector<80x512xbf16>
    %cst_32 = arith.constant dense<0.000000e+00> : vector<8x512xf32>
    %133 = tpu.matmul %131, %132, %cst_32 {dimension_numbers = #tpu.dot_dimension_numbers<[1], [0], [0], [1], [0, 0, 1, 1], [], []>} : vector<8x80xbf16>, vector<80x512xbf16>, vector<8x512xf32> -> vector<8x512xf32>
    %c0_33 = arith.constant 0 : index
    %c0_34 = arith.constant 0 : index
    %c0_35 = arith.constant 0 : index
    %134 = vector.load %arg7[%c0_33, %c0_34, %c0_35] : memref<1x8x512xf32, #tpu.memory_space<vmem>>, vector<1x8x512xf32>
    %135 = vector.shape_cast %134 : vector<1x8x512xf32> to vector<8x512xf32>
    %136 = vector.shape_cast %133 : vector<8x512xf32> to vector<1x8x512xf32>
    tpu.vector_store %arg7[%c0_33, %c0_34, %c0_35], %136 {strides = array<i32>} : memref<1x8x512xf32, #tpu.memory_space<vmem>>, vector<1x8x512xf32>,
    return
  }
  func.func @transform_0(%arg0: i32) -> (i32, i32, i32) {
    %c0_i32 = arith.constant 0 : i32
    %c0_i32_0 = arith.constant 0 : i32
    %c0_i32_1 = arith.constant 0 : i32
    return %arg0, %c0_i32, %c0_i32_0 : i32, i32, i32
  }
  func.func @transform_1(%arg0: i32) -> (i32, i32) {
    %c0_i32 = arith.constant 0 : i32
    %c0_i32_0 = arith.constant 0 : i32
    %c0_i32_1 = arith.constant 0 : i32
    return %c0_i32, %c0_i32_0 : i32, i32
  }
  func.func @transform_2(%arg0: i32) -> (i32, i32) {
    %c0_i32 = arith.constant 0 : i32
    %c0_i32_0 = arith.constant 0 : i32
    %c0_i32_1 = arith.constant 0 : i32
    return %c0_i32, %c0_i32_0 : i32, i32
  }
  func.func @transform_3(%arg0: i32) -> (i32, i32) {
    %c0_i32 = arith.constant 0 : i32
    %c0_i32_0 = arith.constant 0 : i32
    %c0_i32_1 = arith.constant 0 : i32
    return %c0_i32, %c0_i32_0 : i32, i32
  }
  func.func @transform_4(%arg0: i32) -> (i32, i32) {
    %c0_i32 = arith.constant 0 : i32
    %c0_i32_0 = arith.constant 0 : i32
    %c0_i32_1 = arith.constant 0 : i32
    return %c0_i32, %c0_i32_0 : i32, i32
  }
  func.func @transform_5(%arg0: i32) -> (i32, i32) {
    %c0_i32 = arith.constant 0 : i32
    %c0_i32_0 = arith.constant 0 : i32
    %c0_i32_1 = arith.constant 0 : i32
    return %c0_i32, %c0_i32_0 : i32, i32
  }
  func.func @transform_6(%arg0: i32) -> (i32, i32, i32) {
    %c0_i32 = arith.constant 0 : i32
    %c0_i32_0 = arith.constant 0 : i32
    %c0_i32_1 = arith.constant 0 : i32
    return %arg0, %c0_i32, %c0_i32_0 : i32, i32, i32
  }
}

</mosaic_0001>

<bundles_post_ra>
// kernel: _in_block_impl.1
= control target key start
LH: loop header
LB: loop body
LE: loop exit
PB: predicated region body
PF: predicated region fallthrough
CT: control target
= control target key end

     0   :  { %s994_s25 = smov 111   ;;  %s995_s30 = smov 113   ;;  %v1001_v4 = vmov 0   ;;  %v1003_v5 = vmov 1   ;;  %v1004_v7 = vmov 2   ;;  %v46_v8 = vlaneseq  ;;  %s1791_s0 = inlined_call_operand.vmem [shape: f32[1,8,512], index: 0, kind: input, shape index: {}]   ;;  %s1792_s5 = inlined_call_operand.vmem [shape: f32[8,8], index: 5, kind: input, shape index: {}]   ;;  %s1793_s1 = inlined_call_operand.vmem [shape: f32[9,512], index: 1, kind: input, shape index: {}]   ;;  %s1794_s2 = inlined_call_operand.vmem [shape: bf16[8,72], index: 2, kind: input, shape index: {}]   ;;  %s1795_s3 = inlined_call_operand.vmem [shape: bf16[8,72], index: 3, kind: input, shape index: {}]   ;;  %s1796_s4 = inlined_call_operand.vmem [shape: bf16[8,80], index: 4, kind: input, shape index: {}]   ;;  %s1797_s6 = inlined_call_operand.vmem [shape: f32[1,8,512], index: 6, kind: output, shape index: {}]  }
   0x1   :  { %v1045_v0 = vld [vmem:[%s1791_s0 + $0x10] sm:$0xff]  ;;  %v1050_v1 = vld [vmem:[%s1791_s0] sm:$0xff]  ;;  %v1059_v2 = vld [vmem:[%s1791_s0 + $0x18] sm:$0xff]  ;;  %s997_s7 = smov 127   ;;  %s998_s8 = smov 15   ;;  %378 = vmatprep.mubr.bf16.mxu0 %v1001_v4  ;;  %419 = vmatprep.mubr.bf16.mxu1 %v1001_v4  ;;  %vm333_vm1 = vcmask 1043456  }
   0x2   :  { %275 = vrot.lane.b32.xlu1 %v1045_v0, %s994_s25  ;;  %271 = vrot.lane.b32.xlu0 %v1050_v1, %s994_s25  ;;  %v1064_v3 = vld [vmem:[%s1791_s0 + $0x8] sm:$0xff]  ;;  %s996_s0 = smov 112   ;;  %s999_s9 = smov 1   ;;  %v1132_v6 = vld [vmem:[%s1792_s5] sm:$0xff]  ;;  %v1137_v9 = vand.u32 127, %v46_v8  ;;  %v1172_v32 = vshrl.u32 %v46_v8, 7 }
   0x3   :  { %s1000_s10 = smov 17   ;;  %988 = vset.pattern.permute.xlu0 %v1001_v4  ;;  %s1002_s11 = smov 16   ;;  %989 = vset.pattern.permute.xlu1 %v1003_v5  ;;  %v1143_v12 = vld [vmem:[%s1793_s1 + $0x20] ss:$0 sm:$0xff]  ;;  %v1148_v13 = vld [vmem:[%s1793_s1 + $0x28] ss:$0 sm:$0xff] }
   0x4   :  { %vm279_vm0 = vcmp.lt.s32.totalorder %v1137_v9, 111  ;;  %v1153_v14 = vld [vmem:[%s1793_s1 + $0x38] ss:$0 sm:$0xff]  ;;  %v1158_v15 = vld [vmem:[%s1793_s1 + $0x30] ss:$0 sm:$0xff]  ;;  %v1186_v38 = vld [vmem:[%s1793_s1 + $0x8] sm:$0xff] }
   0x5   :  { %v1181_v37 = vld [vmem:[%s1793_s1 + $0x18] sm:$0xff]  ;;  %v253_v39 = vsub.s32 7, %v1172_v32  ;;  %v220_v40 = vsub.s32 6, %v1172_v32  ;;  %v1193_v41 = vld [vmem:[%s1793_s1 + $0x10] sm:$0xff]  ;;  %vm246_vm2 = vcmp.lt.s32.totalorder %v1137_v9, 112  ;;  %v1199_v42 = vld [vmem:[%s1793_s1] sm:$0xff] }
   0x6   :  { %277 = vrot.lane.b32.xlu1 %v1059_v2, %s994_s25  ;;  %273 = vrot.lane.b32.xlu0 %v1064_v3, %s994_s25  ;;  %vm213_vm3 = vcmp.lt.s32.totalorder %v1137_v9, 113  ;;  %v187_v62 = vsub.s32 5, %v1172_v32  ;;  %vm180_vm4 = vcmp.lt.s32.totalorder %v1137_v9, 127  ;;  %vm114_vm5 = vcmp.lt.s32.totalorder %v1137_v9, 15 }
   0x7   :  { %v1203_v43 = vrot.slane %v1181_v37, %v220_v40  ;;  %v1206_v44 = vrot.slane %v1186_v38, %v220_v40  ;;  %v1211_v48 = vrot.slane %v1193_v41, %v220_v40  ;;  %v1216_v50 = vrot.slane %v1199_v42, %v253_v39 }
   0x8   :  { %v1221_v52 = vrot.slane %v1181_v37, %v253_v39  ;;  %v1224_v53 = vrot.slane %v1186_v38, %v253_v39  ;;  %v1227_v54 = vrot.slane %v1193_v41, %v253_v39  ;;  %v1230_v55 = vrot.slane %v1199_v42, %v220_v40 }
   0x9   :  { %vm147_vm6 = vcmp.lt.s32.totalorder %v1137_v9, 1  ;;  %vm48_vm7 = vcmp.lt.s32.totalorder %v1137_v9, 17  ;;  %vm81_vm8 = vcmp.lt.s32.totalorder %v1137_v9, 16  ;;  %vm329_vm9 = vcmask 588800   ;;  %v846_v9 = vld [vmem:[%s1796_s4] sm:$0xf] }
   0xa   :  { %207 = vrot.lane.b32.xlu1 %v1064_v3, %s995_s30  ;;  %205 = vrot.lane.b32.xlu0 %v1050_v1, %s995_s30  ;;  %vm867_vm10 = vcmask 654336  }
   0xe   :  { %211 = vrot.lane.b32.xlu1 %v1059_v2, %s995_s30  ;;  %209 = vrot.lane.b32.xlu0 %v1045_v0, %s995_s30 }
  0x12   :  { %240 = vrot.lane.b32.xlu1 %v1064_v3, %s996_s0  ;;  %238 = vrot.lane.b32.xlu0 %v1050_v1, %s996_s0 }
  0x16   :  { %244 = vrot.lane.b32.xlu1 %v1059_v2, %s996_s0  ;;  %242 = vrot.lane.b32.xlu0 %v1045_v0, %s996_s0 }
  0x1a   :  { %174 = vrot.lane.b32.xlu1 %v1064_v3, %s997_s7  ;;  %172 = vrot.lane.b32.xlu0 %v1050_v1, %s997_s7 }
  0x1e   :  { %178 = vrot.lane.b32.xlu1 %v1059_v2, %s997_s7  ;;  %176 = vrot.lane.b32.xlu0 %v1045_v0, %s997_s7 }
  0x22   :  { %108 = vrot.lane.b32.xlu1 %v1064_v3, %s998_s8  ;;  %106 = vrot.lane.b32.xlu0 %v1050_v1, %s998_s8 }
  0x26   :  { %112 = vrot.lane.b32.xlu1 %v1059_v2, %s998_s8  ;;  %110 = vrot.lane.b32.xlu0 %v1045_v0, %s998_s8 }
  0x2a   :  { %141 = vrot.lane.b32.xlu1 %v1064_v3, %s999_s9  ;;  %139 = vrot.lane.b32.xlu0 %v1050_v1, %s999_s9 }
  0x2e   :  { %145 = vrot.lane.b32.xlu1 %v1059_v2, %s999_s9  ;;  %143 = vrot.lane.b32.xlu0 %v1045_v0, %s999_s9 }
  0x32   :  { %40 = vrot.lane.b32.xlu1 %v1064_v3, %s1000_s10  ;;  %38 = vrot.lane.b32.xlu0 %v1050_v1, %s1000_s10 }
  0x36   :  { %44 = vrot.lane.b32.xlu1 %v1059_v2, %s1000_s10  ;;  %42 = vrot.lane.b32.xlu0 %v1045_v0, %s1000_s10 }
  0x3a   :  { %75 = vrot.lane.b32.xlu1 %v1064_v3, %s1002_s11  ;;  %73 = vrot.lane.b32.xlu0 %v1050_v1, %s1002_s11 }
  0x3e   :  { %79 = vrot.lane.b32.xlu1 %v1059_v2, %s1002_s11  ;;  %77 = vrot.lane.b32.xlu0 %v1045_v0, %s1002_s11 }
  0x42   :  { %326 = vperm.xlu0 %988, %v1132_v6   ;;  %433 = vperm.xlu1 %989, %v1132_v6  }
  0x46   :  { %990 = vset.pattern.permute.xlu1 %v1004_v7 }
  0x47   :  { %441 = vperm.xlu1 %990, %v1132_v6  }
  0x74   :  { %v276_v10 = vpop.permute.xlu1 %275  ;;  %v272_v11 = vpop.permute.xlu0 %271 }
  0x78   :  { %v278_v16 = vpop.permute.xlu1 %277  ;;  %v274_v17 = vpop.permute.xlu0 %273 }
  0x79   :  { %v280_v18 = vsel %vm279_vm0, %v276_v10, %v278_v16  ;;  %v281_v19 = vsel %vm279_vm0, %v274_v17, %v276_v10  ;;  %v282_v20 = vsel %vm279_vm0, %v272_v11, %v274_v17  ;;  %v283_v21 = vsel %vm279_vm0, %v278_v16, %v272_v11 }
  0x7a   :  { %v300_v22 = vmul.f32 %v1143_v12, %v282_v20  ;;  %v301_v23 = vmul.f32 %v1148_v13, %v281_v19  ;;  %v303_v24 = vmul.f32 %v1153_v14, %v283_v21  ;;  %v302_v25 = vmul.f32 %v1158_v15, %v280_v18 }
  0x7c   :  { %v208_v26 = vpop.permute.xlu1 %207  ;;  %v206_v27 = vpop.permute.xlu0 %205  ;;  %v321_v28 = vpack.c.bf16 %v301_v23, %v301_v23  ;;  %v323_v29 = vpack.c.bf16 %v303_v24, %v303_v24  ;;  %v320_v30 = vpack.c.bf16 %v300_v22, %v300_v22  ;;  %v322_v31 = vpack.c.bf16 %v302_v25, %v302_v25 }
  0x7d   :  { %v216_v57 = vsel %vm213_vm3, %v206_v27, %v208_v26  ;;  %v1253_v24 = vrot.slane %v1199_v42, %v187_v62 }
  0x7e   :  { %965 = vmatprep.subr.msk.bf16.mxu0 %vm333_vm1, %v321_v28  ;;  %967 = vmatprep.subr.msk.bf16.mxu1 %vm333_vm1, %v323_v29  ;;  %v335_v33 = vsel %vm333_vm1, %v320_v30, 0  ;;  %v341_v34 = vsel %vm333_vm1, %v322_v31, 0  ;;  %v234_v18 = vmul.f32 %v1230_v55, %v216_v57  ;;  %v1261_v28 = vrot.slane %v1186_v38, %v187_v62 }
  0x7f   :  { %353 = vmatpush1.bf16.msra.mxu0 %v335_v33  ;;  %394 = vmatpush1.bf16.msra.mxu1 %v341_v34  ;;  %v1264_v29 = vrot.slane %v1193_v41, %v187_v62 }
  0x80   :  { %v212_v35 = vpop.permute.xlu1 %211  ;;  %v210_v36 = vpop.permute.xlu0 %209 }
  0x81   :  { %v217_v47 = vsel %vm213_vm3, %v212_v35, %v206_v27  ;;  %v215_v49 = vsel %vm213_vm3, %v208_v26, %v210_v36  ;;  %v214_v56 = vsel %vm213_vm3, %v210_v36, %v212_v35  ;;  %v1256_v26 = vrot.slane %v1181_v37, %v187_v62 }
  0x82   :  { %v237_v58 = vmul.f32 %v1203_v43, %v217_v47  ;;  %v235_v59 = vmul.f32 %v1206_v44, %v215_v49  ;;  %v236_v10 = vmul.f32 %v1211_v48, %v214_v56 }
  0x84   :  { %v241_v45 = vpop.permute.xlu1 %240  ;;  %v239_v46 = vpop.permute.xlu0 %238 }
  0x85   :  { %v249_v51 = vsel %vm246_vm2, %v239_v46, %v241_v45 }
  0x86   :  { %v267_v63 = vmul.f32 %v1216_v50, %v249_v51 }
  0x88   :  { %v245_v60 = vpop.permute.xlu1 %244  ;;  %v243_v61 = vpop.permute.xlu0 %242  ;;  %v316_v25 = vpack.c.bf16 %v267_v63, %v234_v18 }
  0x89   :  { %v250_v5 = vsel %vm246_vm2, %v245_v60, %v239_v46  ;;  %v247_v7 = vsel %vm246_vm2, %v243_v61, %v245_v60  ;;  %v248_v8 = vsel %vm246_vm2, %v241_v45, %v243_v61 }
  0x8a   :  { %v270_v11 = vmul.f32 %v1221_v52, %v250_v5  ;;  %v268_v16 = vmul.f32 %v1224_v53, %v248_v8  ;;  %v269_v17 = vmul.f32 %v1227_v54, %v247_v7 }
  0x8c   :  { %v175_v19 = vpop.permute.xlu1 %174  ;;  %v173_v20 = vpop.permute.xlu0 %172  ;;  %v317_v21 = vpack.c.bf16 %v268_v16, %v235_v59  ;;  %v319_v22 = vpack.c.bf16 %v270_v11, %v237_v58  ;;  %v318_v23 = vpack.c.bf16 %v269_v17, %v236_v10  ;;  %v121_v58 = vsub.s32 2, %v1172_v32 }
  0x8d   :  { %v183_v27 = vsel %vm180_vm4, %v173_v20, %v175_v19  ;;  %v154_v59 = vsub.s32 3, %v1172_v32 }
  0x8e   :  { %354 = vmatprep.subr.bf16.mxu0 %v317_v21  ;;  %395 = vmatprep.subr.bf16.mxu1 %v319_v22  ;;  %v201_v33 = vmul.f32 %v1253_v24, %v183_v27  ;;  %v1296_v62 = vrot.slane %v1193_v41, %v121_v58  ;;  %v1299_v63 = vrot.slane %v1181_v37, %v121_v58 }
  0x8f   :  { %355 = vmatpush1.bf16.msra.mxu0 %v316_v25  ;;  %396 = vmatpush1.bf16.msra.mxu1 %v318_v23  ;;  %v1306_v11 = vrot.slane %v1199_v42, %v154_v59  ;;  %v1309_v16 = vrot.slane %v1193_v41, %v154_v59 }
  0x90   :  { %v179_v30 = vpop.permute.xlu1 %178  ;;  %v177_v31 = vpop.permute.xlu0 %176  ;;  %v312_v57 = vpack.c.bf16 %v201_v33, %v1050_v1 }
  0x91   :  { %v184_v34 = vsel %vm180_vm4, %v179_v30, %v173_v20  ;;  %v181_v35 = vsel %vm180_vm4, %v177_v31, %v179_v30  ;;  %v182_v36 = vsel %vm180_vm4, %v175_v19, %v177_v31  ;;  %v1316_v20 = vrot.slane %v1181_v37, %v154_v59 }
  0x92   :  { %v204_v39 = vmul.f32 %v1256_v26, %v184_v34  ;;  %v202_v40 = vmul.f32 %v1261_v28, %v182_v36  ;;  %v203_v45 = vmul.f32 %v1264_v29, %v181_v35 }
  0x94   :  { %v109_v46 = vpop.permute.xlu1 %108  ;;  %v107_v47 = vpop.permute.xlu0 %106  ;;  %v313_v49 = vpack.c.bf16 %v202_v40, %v1064_v3  ;;  %v315_v51 = vpack.c.bf16 %v204_v39, %v1059_v2  ;;  %v314_v56 = vpack.c.bf16 %v203_v45, %v1045_v0  ;;  %v1284_v3 = vrot.slane %v1186_v38, %v121_v58 }
  0x95   :  { %v1288_v0 = vrot.slane %v1186_v38, %v154_v59  ;;  %v117_v1 = vsel %vm114_vm5, %v107_v47, %v109_v46  ;;  %v1293_v2 = vrot.slane %v1199_v42, %v121_v58 }
  0x96   :  { %356 = vmatprep.subr.bf16.mxu0 %v313_v49  ;;  %397 = vmatprep.subr.bf16.mxu1 %v315_v51  ;;  %v136_v17 = vmul.f32 %v1284_v3, %v117_v1 }
  0x97   :  { %357 = vmatpush1.bf16.msra.mxu0 %v312_v57  ;;  %398 = vmatpush1.bf16.msra.mxu1 %v314_v56  ;;  %v55_v56 = vsub.s32 0, %v1172_v32  ;;  %v88_v57 = vsub.s32 1, %v1172_v32 }
  0x98   :  { %v113_v60 = vpop.permute.xlu1 %112  ;;  %v111_v61 = vpop.permute.xlu0 %110 }
  0x99   :  { %v118_v8 = vsel %vm114_vm5, %v113_v60, %v107_v47  ;;  %v116_v18 = vsel %vm114_vm5, %v109_v46, %v111_v61  ;;  %v115_v21 = vsel %vm114_vm5, %v111_v61, %v113_v60  ;;  %v1336_v60 = vrot.slane %v1186_v38, %v55_v56 }
  0x9a   :  { %v135_v22 = vmul.f32 %v1293_v2, %v118_v8  ;;  %v137_v30 = vmul.f32 %v1296_v62, %v116_v18  ;;  %v138_v35 = vmul.f32 %v1299_v63, %v115_v21  ;;  %v1340_v61 = vrot.slane %v1186_v38, %v88_v57 }
  0x9b   :  { %v1348_v32 = vrot.slane %v1193_v41, %v55_v56  ;;  %v1358_v18 = vrot.slane %v1199_v42, %v88_v57 }
  0x9c   :  { %v142_v5 = vpop.permute.xlu1 %141  ;;  %v140_v7 = vpop.permute.xlu0 %139 }
  0x9d   :  { %v150_v10 = vsel %vm147_vm6, %v140_v7, %v142_v5 }
  0x9e   :  { %v169_v19 = vmul.f32 %v1288_v0, %v150_v10 }
  0xa0   :  { %v146_v23 = vpop.permute.xlu1 %145  ;;  %v144_v25 = vpop.permute.xlu0 %143  ;;  %v309_v27 = vpack.c.bf16 %v169_v19, %v136_v17  ;;  %v1361_v19 = vrot.slane %v1193_v41, %v88_v57 }
  0xa1   :  { %v151_v31 = vsel %vm147_vm6, %v146_v23, %v140_v7  ;;  %v148_v33 = vsel %vm147_vm6, %v144_v25, %v146_v23  ;;  %v149_v34 = vsel %vm147_vm6, %v142_v5, %v144_v25  ;;  %v1345_v5 = vrot.slane %v1199_v42, %v55_v56 }
  0xa2   :  { %v168_v36 = vmul.f32 %v1306_v11, %v151_v31  ;;  %v170_v39 = vmul.f32 %v1309_v16, %v149_v34  ;;  %v171_v40 = vmul.f32 %v1316_v20, %v148_v33  ;;  %358 = vmatprep.subr.bf16.mxu0 %v309_v27  ;;  %v1351_v7 = vrot.slane %v1181_v37, %v55_v56 }
  0xa3   :  { %v1368_v25 = vrot.slane %v1181_v37, %v88_v57 }
  0xa4   :  { %v41_v45 = vpop.permute.xlu1 %40  ;;  %v39_v46 = vpop.permute.xlu0 %38  ;;  %v308_v47 = vpack.c.bf16 %v168_v36, %v135_v22  ;;  %v311_v49 = vpack.c.bf16 %v171_v40, %v138_v35  ;;  %v310_v51 = vpack.c.bf16 %v170_v39, %v137_v30 }
  0xa5   :  { %v51_v1 = vsel %vm48_vm7, %v39_v46, %v41_v45 }
  0xa6   :  { %359 = vmatpush1.bf16.msra.mxu0 %v308_v47  ;;  %399 = vmatprep.subr.bf16.mxu1 %v311_v49  ;;  %v70_v21 = vmul.f32 %v1336_v60, %v51_v1 }
  0xa7   :  { %400 = vmatpush1.bf16.msra.mxu1 %v310_v51  ;;  %v37_v51 = vld [vmem:[%s1794_s2] sm:$0xf] }
  0xa8   :  { %v45_v58 = vpop.permute.xlu1 %44  ;;  %v43_v59 = vpop.permute.xlu0 %42 }
  0xa9   :  { %v52_v17 = vsel %vm48_vm7, %v45_v58, %v39_v46  ;;  %v50_v22 = vsel %vm48_vm7, %v41_v45, %v43_v59  ;;  %v49_v27 = vsel %vm48_vm7, %v43_v59, %v45_v58 }
  0xaa   :  { %v69_v30 = vmul.f32 %v1345_v5, %v52_v17  ;;  %v71_v41 = vmul.f32 %v1348_v32, %v50_v22  ;;  %v72_v36 = vmul.f32 %v1351_v7, %v49_v27 }
  0xac   :  { %v76_v8 = vpop.permute.xlu1 %75  ;;  %v74_v10 = vpop.permute.xlu0 %73 }
  0xad   :  { %v84_v38 = vsel %vm81_vm8, %v74_v10, %v76_v8 }
  0xae   :  { %v103_v23 = vmul.f32 %v1340_v61, %v84_v38 }
  0xb0   :  { %v80_v42 = vpop.permute.xlu1 %79  ;;  %v78_v31 = vpop.permute.xlu0 %77  ;;  %v305_v33 = vpack.c.bf16 %v103_v23, %v70_v21 }
  0xb1   :  { %v85_v34 = vsel %vm81_vm8, %v80_v42, %v74_v10  ;;  %v82_v35 = vsel %vm81_vm8, %v78_v31, %v80_v42  ;;  %v83_v37 = vsel %vm81_vm8, %v76_v8, %v78_v31 }
  0xb2   :  { %v102_v39 = vmul.f32 %v1358_v18, %v85_v34  ;;  %v104_v40 = vmul.f32 %v1361_v19, %v83_v37  ;;  %v105_v45 = vmul.f32 %v1368_v25, %v82_v35  ;;  %360 = vmatprep.subr.bf16.mxu0 %v305_v33 }
  0xb4   :  { %v304_v46 = vpack.c.bf16 %v102_v39, %v69_v30  ;;  %v307_v47 = vpack.c.bf16 %v105_v45, %v72_v36  ;;  %v306_v49 = vpack.c.bf16 %v104_v40, %v71_v41 }
  0xb6   :  { %361 = vmatpush1.bf16.msra.mxu0 %v304_v46  ;;  %401 = vmatprep.subr.bf16.mxu1 %v307_v47 }
  0xb7   :  { %402 = vmatpush1.bf16.msra.mxu1 %v306_v49 }
  0xb9   :  { %966 = vmatmul.mubr.msk.bf16.vlgmr.msra.gmra.mxu0 %vm329_vm9, %v37_v51 }
  0xba   :  { %968 = vmatmul.mubr.msk.bf16.vlgmr.msra.gmra.mxu1 %vm329_vm9, %v37_v51  ;;  %648 = vmatprep.mubr.bf16.mxu0 %v1001_v4 }
  0xbb   :  { %689 = vmatprep.mubr.bf16.mxu1 %v1001_v4 }
  0xbd   :  { %v327_v56 = vpop.permute.xlu0 %326  ;;  %v434_v57 = vpop.permute.xlu1 %433 }
  0xc2   :  { %v442_v30 = vpop.permute.xlu1 %441 }
 0x179   :  { %v380_v58 = vpop.f32.mrf.mxu0 }
 0x17a   :  { %v1391_v59 = vadd.f32 %v380_v58, %v327_v56  ;;  %v421_v1 = vpop.f32.mrf.mxu1 }
 0x17b   :  { %v1393_v8 = vadd.f32 %v421_v1, %v327_v56  ;;  %v382_v10 = vpop.f32.mrf.mxu0  ;;  %v1006_v1 = vmov 4  }
 0x17c   :  { %v1800_v17 = vmax.f32 %v1391_v59, 0.0  ;;  %v1396_v38 = vadd.f32 %v382_v10, %v327_v56  ;;  %v423_v21 = vpop.f32.mrf.mxu1  ;;  %992 = vset.pattern.permute.xlu1 %v1006_v1 }
 0x17d   :  { %v1799_v22 = vmax.f32 %v1393_v8, 0.0  ;;  %v1399_v23 = vadd.f32 %v423_v21, %v327_v56  ;;  %v384_v27 = vpop.f32.mrf.mxu0 }
 0x17e   :  { %v436_v42 = vmul.f32 %v434_v57, %v1800_v17  ;;  %v429_v31 = vmax.f32 %v1396_v38, 0.0  ;;  %v425_v33 = vpop.f32.mrf.mxu1 }
 0x17f   :  { %v438_v41 = vmul.f32 %v434_v57, %v1799_v22  ;;  %v1798_v34 = vmax.f32 %v1399_v23, 0.0  ;;  %v385_v35 = vpop.f32.mrf.mxu0 }
 0x180   :  { %v437_v37 = vmul.f32 %v434_v57, %v429_v31  ;;  %v444_v36 = vadd.f32 %v442_v30, %v436_v42  ;;  %v426_v39 = vpop.f32.mrf.mxu1 }
 0x181   :  { %v439_v40 = vmul.f32 %v434_v57, %v1798_v34  ;;  %v446_v46 = vadd.f32 %v442_v30, %v438_v41  ;;  %v1005_v57 = vmov 3  }
 0x182   :  { %v445_v45 = vadd.f32 %v442_v30, %v437_v37  ;;  %v1411_v47 = vmax.f32 %v444_v36, 0.0  ;;  %991 = vset.pattern.permute.xlu0 %v1005_v57 }
 0x183   :  { %v447_v49 = vadd.f32 %v442_v30, %v439_v40  ;;  %v1417_v56 = vmax.f32 %v446_v46, 0.0 }
 0x184   :  { %v1413_v51 = vmax.f32 %v445_v45, 0.0  ;;  %565 = vrot.lane.b32.xlu0 %v1411_v47, %s994_s25 }
 0x185   :  { %v1421_v58 = vmax.f32 %v447_v49, 0.0 }
 0x186   :  { %567 = vrot.lane.b32.xlu1 %v1413_v51, %s994_s25 }
 0x188   :  { %569 = vrot.lane.b32.xlu0 %v1417_v56, %s994_s25 }
 0x18a   :  { %571 = vrot.lane.b32.xlu1 %v1421_v58, %s994_s25 }
 0x18c   :  { %533 = vrot.lane.b32.xlu0 %v1411_v47, %s995_s30 }
 0x18e   :  { %535 = vrot.lane.b32.xlu1 %v1413_v51, %s995_s30 }
 0x190   :  { %537 = vrot.lane.b32.xlu0 %v1417_v56, %s995_s30 }
 0x192   :  { %539 = vrot.lane.b32.xlu1 %v1421_v58, %s995_s30 }
 0x194   :  { %549 = vrot.lane.b32.xlu0 %v1411_v47, %s996_s0 }
 0x196   :  { %551 = vrot.lane.b32.xlu1 %v1413_v51, %s996_s0 }
 0x198   :  { %553 = vrot.lane.b32.xlu0 %v1417_v56, %s996_s0 }
 0x19a   :  { %555 = vrot.lane.b32.xlu1 %v1421_v58, %s996_s0 }
 0x19c   :  { %517 = vrot.lane.b32.xlu0 %v1411_v47, %s997_s7 }
 0x19e   :  { %519 = vrot.lane.b32.xlu1 %v1413_v51, %s997_s7 }
 0x1a0   :  { %521 = vrot.lane.b32.xlu0 %v1417_v56, %s997_s7 }
 0x1a2   :  { %523 = vrot.lane.b32.xlu1 %v1421_v58, %s997_s7 }
 0x1a4   :  { %485 = vrot.lane.b32.xlu0 %v1411_v47, %s998_s8 }
 0x1a6   :  { %487 = vrot.lane.b32.xlu1 %v1413_v51, %s998_s8 }
 0x1a8   :  { %489 = vrot.lane.b32.xlu0 %v1417_v56, %s998_s8 }
 0x1aa   :  { %491 = vrot.lane.b32.xlu1 %v1421_v58, %s998_s8 }
 0x1ac   :  { %501 = vrot.lane.b32.xlu0 %v1411_v47, %s999_s9 }
 0x1ae   :  { %503 = vrot.lane.b32.xlu1 %v1413_v51, %s999_s9 }
 0x1b0   :  { %505 = vrot.lane.b32.xlu0 %v1417_v56, %s999_s9 }
 0x1b2   :  { %507 = vrot.lane.b32.xlu1 %v1421_v58, %s999_s9 }
 0x1b4   :  { %453 = vrot.lane.b32.xlu0 %v1411_v47, %s1000_s10 }
 0x1b6   :  { %455 = vrot.lane.b32.xlu1 %v1413_v51, %s1000_s10 }
 0x1b8   :  { %457 = vrot.lane.b32.xlu0 %v1417_v56, %s1000_s10 }
 0x1ba   :  { %459 = vrot.lane.b32.xlu1 %v1421_v58, %s1000_s10 }
 0x1bc   :  { %469 = vrot.lane.b32.xlu0 %v1411_v47, %s1002_s11 }
 0x1be   :  { %471 = vrot.lane.b32.xlu1 %v1413_v51, %s1002_s11 }
 0x1c0   :  { %473 = vrot.lane.b32.xlu0 %v1417_v56, %s1002_s11 }
 0x1c2   :  { %475 = vrot.lane.b32.xlu1 %v1421_v58, %s1002_s11 }
 0x1c4   :  { %699 = vperm.xlu0 %991, %v1132_v6  }
 0x1c6   :  { %707 = vperm.xlu1 %992, %v1132_v6  }
 0x1c8   :  { %993 = vset.pattern.permute.xlu0 %v1006_v1 }
 0x1f6   :  { %v566_v10 = vpop.permute.xlu0 %565 }
 0x1f8   :  { %v568_v21 = vpop.permute.xlu1 %567 }
 0x1f9   :  { %v575_v27 = vsel %vm279_vm0, %v566_v10, %v568_v21 }
 0x1fa   :  { %v577_v30 = vmul.f32 %v1143_v12, %v575_v27  ;;  %v570_v42 = vpop.permute.xlu0 %569 }
 0x1fb   :  { %v574_v33 = vsel %vm279_vm0, %v568_v21, %v570_v42 }
 0x1fc   :  { %v597_v41 = vpack.c.bf16 %v577_v30, %v577_v30  ;;  %v578_v35 = vmul.f32 %v1148_v13, %v574_v33  ;;  %v572_v37 = vpop.permute.xlu1 %571 }
 0x1fd   :  { %v573_v36 = vsel %vm279_vm0, %v570_v42, %v572_v37  ;;  %v576_v6 = vsel %vm279_vm0, %v572_v37, %v566_v10 }
 0x1fe   :  { %v598_v39 = vpack.c.bf16 %v578_v35, %v578_v35  ;;  %v579_v40 = vmul.f32 %v1158_v15, %v573_v36  ;;  %v580_v45 = vmul.f32 %v1153_v14, %v576_v6  ;;  %v534_v46 = vpop.permute.xlu0 %533  ;;  %v605_v21 = vsel %vm333_vm1, %v597_v41, 0 }
 0x200   :  { %v599_v49 = vpack.c.bf16 %v579_v40, %v579_v40  ;;  %v600_v57 = vpack.c.bf16 %v580_v45, %v580_v45  ;;  %v536_v1 = vpop.permute.xlu1 %535  ;;  %969 = vmatprep.subr.msk.bf16.mxu0 %vm333_vm1, %v598_v39 }
 0x201   :  { %623 = vmatpush1.bf16.msra.mxu0 %v605_v21  ;;  %v543_v36 = vsel %vm213_vm3, %v534_v46, %v536_v1 }
 0x202   :  { %971 = vmatprep.subr.msk.bf16.mxu1 %vm333_vm1, %v600_v57  ;;  %v538_v27 = vpop.permute.xlu0 %537  ;;  %v611_v30 = vsel %vm333_vm1, %v599_v49, 0 }
 0x203   :  { %664 = vmatpush1.bf16.msra.mxu1 %v611_v30  ;;  %v542_v35 = vsel %vm213_vm3, %v536_v1, %v538_v27  ;;  %v545_v30 = vmul.f32 %v543_v36, %v1230_v55 }
 0x204   :  { %v540_v10 = vpop.permute.xlu1 %539  ;;  %v546_v49 = vmul.f32 %v542_v35, %v1206_v44 }
 0x205   :  { %v541_v41 = vsel %vm213_vm3, %v538_v27, %v540_v10  ;;  %v544_v39 = vsel %vm213_vm3, %v540_v10, %v534_v46 }
 0x206   :  { %v550_v42 = vpop.permute.xlu0 %549  ;;  %v547_v1 = vmul.f32 %v541_v41, %v1211_v48  ;;  %v548_v10 = vmul.f32 %v544_v39, %v1203_v43 }
 0x208   :  { %v552_v33 = vpop.permute.xlu1 %551 }
 0x209   :  { %v559_v37 = vsel %vm246_vm2, %v550_v42, %v552_v33 }
 0x20a   :  { %v554_v6 = vpop.permute.xlu0 %553  ;;  %v561_v40 = vmul.f32 %v559_v37, %v1216_v50 }
 0x20b   :  { %v558_v45 = vsel %vm246_vm2, %v552_v33, %v554_v6 }
 0x20c   :  { %v562_v57 = vmul.f32 %v558_v45, %v1224_v53  ;;  %v556_v21 = vpop.permute.xlu1 %555  ;;  %v593_v45 = vpack.c.bf16 %v561_v40, %v545_v30 }
 0x20d   :  { %v557_v27 = vsel %vm246_vm2, %v554_v6, %v556_v21  ;;  %v560_v46 = vsel %vm246_vm2, %v556_v21, %v550_v42 }
 0x20e   :  { %v563_v37 = vmul.f32 %v557_v27, %v1227_v54  ;;  %v564_v33 = vmul.f32 %v560_v46, %v1221_v52  ;;  %v518_v35 = vpop.permute.xlu0 %517  ;;  %v594_v34 = vpack.c.bf16 %v562_v57, %v546_v49 }
 0x210   :  { %v595_v22 = vpack.c.bf16 %v563_v37, %v547_v1  ;;  %v520_v17 = vpop.permute.xlu1 %519  ;;  %624 = vmatprep.subr.bf16.mxu0 %v594_v34  ;;  %v596_v36 = vpack.c.bf16 %v564_v33, %v548_v10 }
 0x211   :  { %v527_v41 = vsel %vm180_vm4, %v518_v35, %v520_v17  ;;  %625 = vmatpush1.bf16.msra.mxu0 %v593_v45 }
 0x212   :  { %665 = vmatprep.subr.bf16.mxu1 %v596_v36  ;;  %v522_v6 = vpop.permute.xlu0 %521  ;;  %v529_v42 = vmul.f32 %v527_v41, %v1253_v24 }
 0x213   :  { %v526_v39 = vsel %vm180_vm4, %v520_v17, %v522_v6  ;;  %666 = vmatpush1.bf16.msra.mxu1 %v595_v22 }
 0x214   :  { %v530_v21 = vmul.f32 %v526_v39, %v1261_v28  ;;  %v524_v49 = vpop.permute.xlu1 %523  ;;  %v589_v46 = vpack.c.bf16 %v529_v42, %v1411_v47 }
 0x215   :  { %v525_v40 = vsel %vm180_vm4, %v522_v6, %v524_v49  ;;  %v528_v34 = vsel %vm180_vm4, %v524_v49, %v518_v35 }
 0x216   :  { %v531_v57 = vmul.f32 %v525_v40, %v1264_v29  ;;  %v532_v30 = vmul.f32 %v528_v34, %v1256_v26  ;;  %v486_v1 = vpop.permute.xlu0 %485  ;;  %v590_v27 = vpack.c.bf16 %v530_v21, %v1413_v51 }
 0x218   :  { %v591_v17 = vpack.c.bf16 %v531_v57, %v1417_v56  ;;  %v488_v22 = vpop.permute.xlu1 %487  ;;  %626 = vmatprep.subr.bf16.mxu0 %v590_v27  ;;  %v592_v10 = vpack.c.bf16 %v532_v30, %v1421_v58 }
 0x219   :  { %627 = vmatpush1.bf16.msra.mxu0 %v589_v46  ;;  %v495_v45 = vsel %vm114_vm5, %v486_v1, %v488_v22 }
 0x21a   :  { %667 = vmatprep.subr.bf16.mxu1 %v592_v10  ;;  %v490_v37 = vpop.permute.xlu0 %489  ;;  %v498_v47 = vmul.f32 %v495_v45, %v1284_v3 }
 0x21b   :  { %668 = vmatpush1.bf16.msra.mxu1 %v591_v17  ;;  %v494_v39 = vsel %vm114_vm5, %v488_v22, %v490_v37 }
 0x21c   :  { %v492_v33 = vpop.permute.xlu1 %491  ;;  %v499_v22 = vmul.f32 %v494_v39, %v1296_v62 }
 0x21d   :  { %v493_v58 = vsel %vm114_vm5, %v490_v37, %v492_v33  ;;  %v496_v6 = vsel %vm114_vm5, %v492_v33, %v486_v1 }
 0x21e   :  { %v502_v35 = vpop.permute.xlu0 %501  ;;  %v497_v30 = vmul.f32 %v496_v6, %v1293_v2  ;;  %v500_v1 = vmul.f32 %v493_v58, %v1299_v63 }
 0x220   :  { %v504_v36 = vpop.permute.xlu1 %503 }
 0x221   :  { %v511_v51 = vsel %vm147_vm6, %v502_v35, %v504_v36 }
 0x222   :  { %v514_v56 = vmul.f32 %v511_v51, %v1288_v0  ;;  %v506_v41 = vpop.permute.xlu0 %505 }
 0x223   :  { %v510_v42 = vsel %vm147_vm6, %v504_v36, %v506_v41 }
 0x224   :  { %v508_v21 = vpop.permute.xlu1 %507  ;;  %v586_v49 = vpack.c.bf16 %v514_v56, %v498_v47  ;;  %v515_v40 = vmul.f32 %v510_v42, %v1309_v16 }
 0x225   :  { %v509_v34 = vsel %vm147_vm6, %v506_v41, %v508_v21  ;;  %v512_v57 = vsel %vm147_vm6, %v508_v21, %v502_v35 }
 0x226   :  { %v513_v27 = vmul.f32 %v512_v57, %v1306_v11  ;;  %v516_v46 = vmul.f32 %v509_v34, %v1316_v20  ;;  %628 = vmatprep.subr.bf16.mxu0 %v586_v49  ;;  %v454_v17 = vpop.permute.xlu0 %453  ;;  %v587_v45 = vpack.c.bf16 %v515_v40, %v499_v22 }
 0x228   :  { %v585_v10 = vpack.c.bf16 %v513_v27, %v497_v30  ;;  %v456_v37 = vpop.permute.xlu1 %455  ;;  %v588_v33 = vpack.c.bf16 %v516_v46, %v500_v1 }
 0x229   :  { %v463_v47 = vsel %vm48_vm7, %v454_v17, %v456_v37 }
 0x22a   :  { %629 = vmatpush1.bf16.msra.mxu0 %v585_v10  ;;  %669 = vmatprep.subr.bf16.mxu1 %v588_v33  ;;  %v458_v36 = vpop.permute.xlu0 %457  ;;  %v466_v58 = vmul.f32 %v463_v47, %v1336_v60 }
 0x22b   :  { %670 = vmatpush1.bf16.msra.mxu1 %v587_v45  ;;  %v462_v40 = vsel %vm48_vm7, %v456_v37, %v458_v36 }
 0x22c   :  { %v460_v35 = vpop.permute.xlu1 %459  ;;  %v467_v37 = vmul.f32 %v462_v40, %v1348_v32 }
 0x22d   :  { %v461_v39 = vsel %vm48_vm7, %v458_v36, %v460_v35  ;;  %v464_v21 = vsel %vm48_vm7, %v460_v35, %v454_v17  ;;  %v452_v35 = vld [vmem:[%s1795_s3] sm:$0xf] }
 0x22e   :  { %v470_v51 = vpop.permute.xlu0 %469  ;;  %v465_v46 = vmul.f32 %v464_v21, %v1345_v5  ;;  %v468_v17 = vmul.f32 %v461_v39, %v1351_v7 }
 0x230   :  { %v472_v56 = vpop.permute.xlu1 %471 }
 0x231   :  { %v479_v41 = vsel %vm81_vm8, %v470_v51, %v472_v56 }
 0x232   :  { %v482_v6 = vmul.f32 %v479_v41, %v1340_v61  ;;  %v474_v42 = vpop.permute.xlu0 %473 }
 0x233   :  { %v478_v49 = vsel %vm81_vm8, %v472_v56, %v474_v42 }
 0x234   :  { %v476_v34 = vpop.permute.xlu1 %475  ;;  %v582_v57 = vpack.c.bf16 %v482_v6, %v466_v58  ;;  %v483_v30 = vmul.f32 %v478_v49, %v1361_v19 }
 0x235   :  { %v477_v1 = vsel %vm81_vm8, %v474_v42, %v476_v34  ;;  %v480_v27 = vsel %vm81_vm8, %v476_v34, %v470_v51 }
 0x236   :  { %v481_v22 = vmul.f32 %v480_v27, %v1358_v18  ;;  %v484_v10 = vmul.f32 %v477_v1, %v1368_v25  ;;  %630 = vmatprep.subr.bf16.mxu0 %v582_v57  ;;  %v583_v36 = vpack.c.bf16 %v483_v30, %v467_v37 }
 0x238   :  { %v581_v33 = vpack.c.bf16 %v481_v22, %v465_v46  ;;  %v584_v45 = vpack.c.bf16 %v484_v10, %v468_v17 }
 0x23a   :  { %631 = vmatpush1.bf16.msra.mxu0 %v581_v33  ;;  %671 = vmatprep.subr.bf16.mxu1 %v584_v45 }
 0x23b   :  { %672 = vmatpush1.bf16.msra.mxu1 %v583_v36 }
 0x23d   :  { %970 = vmatmul.mubr.msk.bf16.vlgmr.msra.gmra.mxu0 %vm329_vm9, %v452_v35 }
 0x23e   :  { %972 = vmatmul.mubr.msk.bf16.vlgmr.msra.gmra.mxu1 %vm329_vm9, %v452_v35  ;;  %903 = vmatprep.mubr.bf16.mxu0 %v1001_v4 }
 0x23f   :  { %944 = vmatprep.mubr.bf16.mxu1 %v1001_v4  ;;  %v700_v51 = vpop.permute.xlu0 %699 }
 0x241   :  { %v708_v56 = vpop.permute.xlu1 %707 }
 0x2fd   :  { %v650_v47 = vpop.f32.mrf.mxu0 }
 0x2fe   :  { %v702_v41 = vmul.f32 %v700_v51, %v650_v47  ;;  %v691_v58 = vpop.f32.mrf.mxu1 }
 0x2ff   :  { %v704_v6 = vmul.f32 %v700_v51, %v691_v58  ;;  %v652_v42 = vpop.f32.mrf.mxu0 }
 0x300   :  { %v710_v39 = vadd.f32 %v708_v56, %v702_v41  ;;  %v703_v21 = vmul.f32 %v700_v51, %v652_v42  ;;  %v693_v49 = vpop.f32.mrf.mxu1 }
 0x301   :  { %v705_v40 = vmul.f32 %v700_v51, %v693_v49  ;;  %v654_v34 = vpop.f32.mrf.mxu0  ;;  %v712_v57 = vadd.f32 %v708_v56, %v704_v6  ;;  %v1801_v49 = vmax.f32 %v1391_v59, 0.0 }
 0x302   :  { %v1596_v30 = vmax.f32 %v710_v39, 0.0  ;;  %v711_v1 = vadd.f32 %v708_v56, %v703_v21  ;;  %v695_v27 = vpop.f32.mrf.mxu1 }
 0x303   :  { %v655_v46 = vpop.f32.mrf.mxu0  ;;  %v713_v4 = vadd.f32 %v708_v56, %v705_v40  ;;  %v1602_v10 = vmax.f32 %v712_v57, 0.0 }
 0x304   :  { %v1598_v17 = vmax.f32 %v711_v1, 0.0  ;;  %v696_v22 = vpop.f32.mrf.mxu1  ;;  %830 = vrot.lane.b32.xlu1 %v1596_v30, %s994_s25  ;;  %v1803_v1 = vmax.f32 %v1399_v23, 0.0 }
 0x305   :  { %v1606_v37 = vmax.f32 %v713_v4, 0.0 }
 0x306   :  { %832 = vrot.lane.b32.xlu0 %v1598_v17, %s994_s25 }
 0x308   :  { %834 = vrot.lane.b32.xlu1 %v1602_v10, %s994_s25 }
 0x30a   :  { %836 = vrot.lane.b32.xlu0 %v1606_v37, %s994_s25 }
 0x30c   :  { %798 = vrot.lane.b32.xlu1 %v1596_v30, %s995_s30 }
 0x30e   :  { %800 = vrot.lane.b32.xlu0 %v1598_v17, %s995_s30 }
 0x310   :  { %802 = vrot.lane.b32.xlu1 %v1602_v10, %s995_s30 }
 0x312   :  { %804 = vrot.lane.b32.xlu0 %v1606_v37, %s995_s30 }
 0x314   :  { %814 = vrot.lane.b32.xlu1 %v1596_v30, %s996_s0 }
 0x316   :  { %816 = vrot.lane.b32.xlu0 %v1598_v17, %s996_s0 }
 0x318   :  { %818 = vrot.lane.b32.xlu1 %v1602_v10, %s996_s0 }
 0x31a   :  { %820 = vrot.lane.b32.xlu0 %v1606_v37, %s996_s0 }
 0x31c   :  { %782 = vrot.lane.b32.xlu1 %v1596_v30, %s997_s7 }
 0x31e   :  { %784 = vrot.lane.b32.xlu0 %v1598_v17, %s997_s7 }
 0x320   :  { %786 = vrot.lane.b32.xlu1 %v1602_v10, %s997_s7 }
 0x322   :  { %788 = vrot.lane.b32.xlu0 %v1606_v37, %s997_s7 }
 0x324   :  { %750 = vrot.lane.b32.xlu1 %v1596_v30, %s998_s8 }
 0x326   :  { %752 = vrot.lane.b32.xlu0 %v1598_v17, %s998_s8 }
 0x328   :  { %754 = vrot.lane.b32.xlu1 %v1602_v10, %s998_s8 }
 0x32a   :  { %756 = vrot.lane.b32.xlu0 %v1606_v37, %s998_s8 }
 0x32c   :  { %766 = vrot.lane.b32.xlu1 %v1596_v30, %s999_s9 }
 0x32e   :  { %768 = vrot.lane.b32.xlu0 %v1598_v17, %s999_s9 }
 0x330   :  { %770 = vrot.lane.b32.xlu1 %v1602_v10, %s999_s9 }
 0x332   :  { %772 = vrot.lane.b32.xlu0 %v1606_v37, %s999_s9 }
 0x334   :  { %718 = vrot.lane.b32.xlu1 %v1596_v30, %s1000_s10 }
 0x336   :  { %720 = vrot.lane.b32.xlu0 %v1598_v17, %s1000_s10 }
 0x338   :  { %722 = vrot.lane.b32.xlu1 %v1602_v10, %s1000_s10 }
 0x33a   :  { %724 = vrot.lane.b32.xlu0 %v1606_v37, %s1000_s10 }
 0x33c   :  { %734 = vrot.lane.b32.xlu1 %v1596_v30, %s1002_s11 }
 0x33e   :  { %736 = vrot.lane.b32.xlu0 %v1598_v17, %s1002_s11 }
 0x340   :  { %738 = vrot.lane.b32.xlu1 %v1602_v10, %s1002_s11 }
 0x342   :  { %740 = vrot.lane.b32.xlu0 %v1606_v37, %s1002_s11 }
 0x376   :  { %v831_v33 = vpop.permute.xlu1 %830 }
 0x378   :  { %v833_v45 = vpop.permute.xlu0 %832 }
 0x379   :  { %v840_v36 = vsel %vm279_vm0, %v831_v33, %v833_v45 }
 0x37a   :  { %v835_v35 = vpop.permute.xlu1 %834  ;;  %v842_v51 = vmul.f32 %v1143_v12, %v840_v36 }
 0x37b   :  { %v839_v47 = vsel %vm279_vm0, %v833_v45, %v835_v35 }
 0x37c   :  { %v843_v56 = vmul.f32 %v1148_v13, %v839_v47  ;;  %v837_v41 = vpop.permute.xlu0 %836  ;;  %v863_v40 = vpack.c.bf16 %v1801_v49, %v842_v51  ;;  %v1802_v13 = vmax.f32 %v1393_v8, 0.0 }
 0x37d   :  { %v838_v58 = vsel %vm279_vm0, %v835_v35, %v837_v41  ;;  %v841_v6 = vsel %vm279_vm0, %v837_v41, %v831_v33 }
 0x37e   :  { %v844_v42 = vmul.f32 %v1158_v15, %v838_v58  ;;  %v845_v39 = vmul.f32 %v1153_v14, %v841_v6  ;;  %v799_v21 = vpop.permute.xlu1 %798  ;;  %v864_v12 = vpack.c.bf16 %v429_v31, %v843_v56 }
 0x380   :  { %v865_v34 = vpack.c.bf16 %v1802_v13, %v844_v42  ;;  %v801_v57 = vpop.permute.xlu0 %800  ;;  %877 = vmatprep.subr.bf16.mxu0 %v864_v12  ;;  %v866_v27 = vpack.c.bf16 %v1803_v1, %v845_v39 }
 0x381   :  { %878 = vmatpush1.bf16.msra.mxu0 %v863_v40  ;;  %v808_v8 = vsel %vm213_vm3, %v799_v21, %v801_v57 }
 0x382   :  { %918 = vmatprep.subr.bf16.mxu1 %v866_v27  ;;  %v803_v15 = vpop.permute.xlu1 %802  ;;  %v810_v47 = vmul.f32 %v808_v8, %v1230_v55 }
 0x383   :  { %919 = vmatpush1.bf16.msra.mxu1 %v865_v34  ;;  %v807_v38 = vsel %vm213_vm3, %v801_v57, %v803_v15 }
 0x384   :  { %v805_v14 = vpop.permute.xlu0 %804  ;;  %v811_v36 = vmul.f32 %v807_v38, %v1206_v44 }
 0x385   :  { %v806_v23 = vsel %vm213_vm3, %v803_v15, %v805_v14  ;;  %v809_v22 = vsel %vm213_vm3, %v805_v14, %v799_v21 }
 0x386   :  { %v815_v46 = vpop.permute.xlu1 %814  ;;  %v812_v56 = vmul.f32 %v806_v23, %v1211_v48 }
 0x388   :  { %v817_v4 = vpop.permute.xlu0 %816 }
 0x389   :  { %v824_v59 = vsel %vm246_vm2, %v815_v46, %v817_v4 }
 0x38a   :  { %v819_v31 = vpop.permute.xlu1 %818  ;;  %v826_v33 = vmul.f32 %v824_v59, %v1216_v50  ;;  %v813_v50 = vmul.f32 %v809_v22, %v1203_v43 }
 0x38b   :  { %v823_v45 = vsel %vm246_vm2, %v817_v4, %v819_v31 }
 0x38c   :  { %v827_v35 = vmul.f32 %v823_v45, %v1224_v53  ;;  %v821_v51 = vpop.permute.xlu0 %820  ;;  %v859_v53 = vpack.c.bf16 %v826_v33, %v810_v47 }
 0x38d   :  { %v822_v41 = vsel %vm246_vm2, %v819_v31, %v821_v51  ;;  %v825_v58 = vsel %vm246_vm2, %v821_v51, %v815_v46 }
 0x38e   :  { %v828_v6 = vmul.f32 %v822_v41, %v1227_v54  ;;  %v829_v42 = vmul.f32 %v825_v58, %v1221_v52  ;;  %v783_v44 = vpop.permute.xlu1 %782  ;;  %v860_v39 = vpack.c.bf16 %v827_v35, %v811_v36 }
 0x390   :  { %v861_v21 = vpack.c.bf16 %v828_v6, %v812_v56  ;;  %v785_v12 = vpop.permute.xlu0 %784  ;;  %879 = vmatprep.subr.bf16.mxu0 %v860_v39  ;;  %v862_v55 = vpack.c.bf16 %v829_v42, %v813_v50 }
 0x391   :  { %v792_v48 = vsel %vm180_vm4, %v783_v44, %v785_v12  ;;  %880 = vmatpush1.bf16.msra.mxu0 %v859_v53 }
 0x392   :  { %920 = vmatprep.subr.bf16.mxu1 %v862_v55  ;;  %v787_v49 = vpop.permute.xlu1 %786  ;;  %v794_v40 = vmul.f32 %v792_v48, %v1253_v24 }
 0x393   :  { %v791_v43 = vsel %vm180_vm4, %v785_v12, %v787_v49  ;;  %921 = vmatpush1.bf16.msra.mxu1 %v861_v21 }
 0x394   :  { %v795_v52 = vmul.f32 %v791_v43, %v1261_v28  ;;  %v789_v54 = vpop.permute.xlu0 %788  ;;  %v855_v15 = vpack.c.bf16 %v794_v40, %v1596_v30 }
 0x395   :  { %v790_v13 = vsel %vm180_vm4, %v787_v49, %v789_v54  ;;  %v793_v34 = vsel %vm180_vm4, %v789_v54, %v783_v44 }
 0x396   :  { %v796_v57 = vmul.f32 %v790_v13, %v1264_v29  ;;  %v797_v1 = vmul.f32 %v793_v34, %v1256_v26  ;;  %v751_v27 = vpop.permute.xlu1 %750  ;;  %v856_v24 = vpack.c.bf16 %v795_v52, %v1598_v17 }
 0x398   :  { %v857_v14 = vpack.c.bf16 %v796_v57, %v1602_v10  ;;  %v753_v46 = vpop.permute.xlu0 %752  ;;  %881 = vmatprep.subr.bf16.mxu0 %v856_v24  ;;  %v858_v28 = vpack.c.bf16 %v797_v1, %v1606_v37 }
 0x399   :  { %882 = vmatpush1.bf16.msra.mxu0 %v855_v15  ;;  %v760_v26 = vsel %vm114_vm5, %v751_v27, %v753_v46 }
 0x39a   :  { %922 = vmatprep.subr.bf16.mxu1 %v858_v28  ;;  %v755_v4 = vpop.permute.xlu1 %754  ;;  %v763_v30 = vmul.f32 %v760_v26, %v1284_v3 }
 0x39b   :  { %923 = vmatpush1.bf16.msra.mxu1 %v857_v14  ;;  %v759_v22 = vsel %vm114_vm5, %v753_v46, %v755_v4 }
 0x39c   :  { %v757_v38 = vpop.permute.xlu0 %756  ;;  %v764_v58 = vmul.f32 %v759_v22, %v1296_v62 }
 0x39d   :  { %v758_v37 = vsel %vm114_vm5, %v755_v4, %v757_v38  ;;  %v761_v23 = vsel %vm114_vm5, %v757_v38, %v751_v27 }
 0x39e   :  { %v767_v59 = vpop.permute.xlu1 %766  ;;  %v762_v35 = vmul.f32 %v761_v23, %v1293_v2  ;;  %v765_v51 = vmul.f32 %v758_v37, %v1299_v63 }
 0x3a0   :  { %v769_v29 = vpop.permute.xlu0 %768 }
 0x3a1   :  { %v776_v17 = vsel %vm147_vm6, %v767_v59, %v769_v29 }
 0x3a2   :  { %v779_v10 = vmul.f32 %v776_v17, %v1288_v0  ;;  %v771_v8 = vpop.permute.xlu1 %770 }
 0x3a3   :  { %v775_v31 = vsel %vm147_vm6, %v769_v29, %v771_v8 }
 0x3a4   :  { %v773_v33 = vpop.permute.xlu0 %772  ;;  %v852_v45 = vpack.c.bf16 %v779_v10, %v763_v30  ;;  %v780_v36 = vmul.f32 %v775_v31, %v1309_v16 }
 0x3a5   :  { %v774_v3 = vsel %vm147_vm6, %v771_v8, %v773_v33  ;;  %v777_v0 = vsel %vm147_vm6, %v773_v33, %v767_v59 }
 0x3a6   :  { %v778_v47 = vmul.f32 %v777_v0, %v1306_v11  ;;  %v781_v56 = vmul.f32 %v774_v3, %v1316_v20  ;;  %883 = vmatprep.subr.bf16.mxu0 %v852_v45  ;;  %v719_v41 = vpop.permute.xlu1 %718  ;;  %v853_v42 = vpack.c.bf16 %v780_v36, %v764_v58 }
 0x3a8   :  { %v851_v50 = vpack.c.bf16 %v778_v47, %v762_v35  ;;  %v721_v16 = vpop.permute.xlu0 %720  ;;  %v854_v6 = vpack.c.bf16 %v781_v56, %v765_v51 }
 0x3a9   :  { %v728_v63 = vsel %vm48_vm7, %v719_v41, %v721_v16 }
 0x3aa   :  { %884 = vmatpush1.bf16.msra.mxu0 %v851_v50  ;;  %924 = vmatprep.subr.bf16.mxu1 %v854_v6  ;;  %v723_v44 = vpop.permute.xlu1 %722  ;;  %v731_v53 = vmul.f32 %v728_v63, %v1336_v60 }
 0x3ab   :  { %925 = vmatpush1.bf16.msra.mxu1 %v853_v42  ;;  %v727_v49 = vsel %vm48_vm7, %v721_v16, %v723_v44 }
 0x3ac   :  { %v725_v39 = vpop.permute.xlu0 %724  ;;  %v732_v1 = vmul.f32 %v727_v49, %v1348_v32 }
 0x3ad   :  { %v726_v12 = vsel %vm48_vm7, %v723_v44, %v725_v39  ;;  %v729_v55 = vsel %vm48_vm7, %v725_v39, %v719_v41 }
 0x3ae   :  { %v735_v2 = vpop.permute.xlu1 %734  ;;  %v730_v54 = vmul.f32 %v729_v55, %v1345_v5  ;;  %v733_v13 = vmul.f32 %v726_v12, %v1351_v7 }
 0x3b0   :  { %v737_v11 = vpop.permute.xlu0 %736 }
 0x3b1   :  { %v744_v20 = vsel %vm81_vm8, %v735_v2, %v737_v11 }
 0x3b2   :  { %v747_v62 = vmul.f32 %v744_v20, %v1340_v61  ;;  %v739_v21 = vpop.permute.xlu1 %738 }
 0x3b3   :  { %v743_v48 = vsel %vm81_vm8, %v737_v11, %v739_v21 }
 0x3b4   :  { %v741_v40 = vpop.permute.xlu0 %740  ;;  %v848_v43 = vpack.c.bf16 %v747_v62, %v731_v53  ;;  %v748_v52 = vmul.f32 %v743_v48, %v1361_v19 }
 0x3b5   :  { %v742_v60 = vsel %vm81_vm8, %v739_v21, %v741_v40  ;;  %v745_v61 = vsel %vm81_vm8, %v741_v40, %v735_v2 }
 0x3b6   :  { %v746_v34 = vmul.f32 %v745_v61, %v1358_v18  ;;  %v749_v57 = vmul.f32 %v742_v60, %v1368_v25  ;;  %885 = vmatprep.subr.bf16.mxu0 %v848_v43  ;;  %v849_v19 = vpack.c.bf16 %v748_v52, %v732_v1 }
 0x3b8   :  { %v847_v27 = vpack.c.bf16 %v746_v34, %v730_v54  ;;  %v850_v24 = vpack.c.bf16 %v749_v57, %v733_v13 }
 0x3ba   :  { %886 = vmatpush1.bf16.msra.mxu0 %v847_v27  ;;  %926 = vmatprep.subr.bf16.mxu1 %v850_v24 }
 0x3bb   :  { %927 = vmatpush1.bf16.msra.mxu1 %v849_v19 }
 0x3bd   :  { %973 = vmatmul.mubr.msk.bf16.vlgmr.msra.gmra.mxu0 %vm867_vm10, %v846_v9 }
 0x3be   :  { %974 = vmatmul.mubr.msk.bf16.vlgmr.msra.gmra.mxu1 %vm867_vm10, %v846_v9 }
 0x47d   :  { %v905_v5 = vpop.f32.mrf.mxu0 }
 0x47e   :  { %953 = vst [vmem:[%s1797_s6] sm:$0xff] %v905_v5  ;;  %v946_v7 = vpop.f32.mrf.mxu1 }
 0x47f   :  { %955 = vst [vmem:[%s1797_s6 + $0x10] sm:$0xff] %v946_v7  ;;  %v907_v32 = vpop.f32.mrf.mxu0 }
 0x480   :  { %954 = vst [vmem:[%s1797_s6 + $0x8] sm:$0xff] %v907_v32  ;;  %v948_v18 = vpop.f32.mrf.mxu1 }
 0x481   :  { %956 = vst [vmem:[%s1797_s6 + $0x18] sm:$0xff] %v948_v18  ;;  %v909_v25 = vpop.f32.mrf.mxu0 }
 0x482   :  { %v950_v15 = vpop.f32.mrf.mxu1 }
 0x483   :  { %v910_v14 = vpop.f32.mrf.mxu0 }
 0x484   :  { %v951_v46 = vpop.f32.mrf.mxu1 }

</bundles_post_ra>
